<compile_context>
chip_gen: v7x
topology: tpu7x:2x2x1
jax: 0.10.0
libtpu: 0.0.40
codegen_flags: <defaults>
</compile_context>

<pallas_src>
import functools
import math

import numpy as np

import jax
import jax.numpy as jnp
from jax.experimental import pallas as pl
from jax.experimental.pallas import tpu as pltpu


_SQRT_2_OVER_PI = math.sqrt(2.0 / math.pi)


def _gelu_new(x):
    # GPT-2 "gelu_new": 0.5*x*(1+tanh(sqrt(2/pi)*(x+0.044715*x^3)))
    x3 = x * x * x
    return 0.5 * x * (1.0 + jnp.tanh(_SQRT_2_OVER_PI * (x + 0.044715 * x3)))


def mlp_kernel(x_ref, wfc_ref, bfc_ref, wproj_ref, bproj_ref, o_ref, acc_ref):
    # Grid: (i over token tiles [parallel], k over n_state slabs [arbitrary]).
    # x_ref:     (tm, nx)   -- same block across k (Pallas skips the re-DMA)
    # wfc_ref:   (nx, tk)      bfc_ref:   (1, tk)
    # wproj_ref: (tk, nx)      bproj_ref: (1, nx)
    # o_ref:     (tm, nx)      acc_ref:   (tm, nx) f32 scratch
    k = pl.program_id(1)

    @pl.when(k == 0)
    def _():
        acc_ref[...] = jnp.zeros_like(acc_ref)

    # First matmul on the MXU, accumulate in f32.
    h = jnp.dot(x_ref[...], wfc_ref[...], preferred_element_type=jnp.float32)
    h = h + bfc_ref[...].astype(jnp.float32)
    # gelu stays in f32 (v5e VPU/EUP have no bf16 path); single downcast below.
    h = _gelu_new(h)

    # Partial projection for this n_state slab -> accumulate.
    acc_ref[...] += jnp.dot(h.astype(wproj_ref.dtype), wproj_ref[...],
                            preferred_element_type=jnp.float32)

    @pl.when(k == pl.num_programs(1) - 1)
    def _():
        out = acc_ref[...] + bproj_ref[...].astype(jnp.float32)
        o_ref[...] = out.astype(o_ref.dtype)


def _round_up(x, m):
    return ((x + m - 1) // m) * m


@functools.partial(jax.jit, static_argnames=("tm", "tk", "compute_dtype"))
def gpt2_mlp(x, w_fc, b_fc, w_proj, b_proj, *, tm=256, tk=512,
             compute_dtype=None):
    """GPT-2 MLP forward.  x: [batch, seq, n_embd] -> [batch, seq, n_embd].

    compute_dtype: dtype fed to the MXU (e.g. jnp.bfloat16 on v6e/v7x);
    biases, gelu and the accumulator stay f32.  Dropout = identity (inference).
    """
    batch, seq, nx = x.shape
    n_state = w_fc.shape[1]
    out_dtype = x.dtype

    cdt = np.dtype(compute_dtype) if compute_dtype is not None else np.dtype(x.dtype)

    x2d = x.reshape(batch * seq, nx).astype(cdt)
    w_fc_c = w_fc.astype(cdt)
    w_proj_c = w_proj.astype(cdt)
    b_fc2 = b_fc.reshape(1, n_state).astype(jnp.float32)
    b_proj2 = b_proj.reshape(1, nx).astype(jnp.float32)

    M = batch * seq
    # Row-tile alignment: 8 sublanes (32-bit) / 16 (16-bit packing).
    row_mult = 16 if cdt.itemsize == 2 else 8
    tm_eff = max(row_mult, min(tm, _round_up(M, row_mult)))
    M_pad = _round_up(M, tm_eff)
    if M_pad != M:
        x2d = jnp.pad(x2d, ((0, M_pad - M), (0, 0)))

    # n_state (reduction) slab: multiple of 128 lanes or the full dimension.
    tk_eff = min(tk, n_state)
    if n_state % tk_eff != 0 or (tk_eff % 128 != 0 and tk_eff != n_state):
        tk_eff = n_state

    grid_m = M_pad // tm_eff
    grid_k = n_state // tk_eff

    # VMEM working set: double-buffered input blocks + double-buffered output
    # block + f32 accumulator scratch (plus 50% headroom).
    itemsize = cdt.itemsize
    working_set = (
        2 * (tm_eff * nx + nx * tk_eff + tk_eff * nx) * itemsize
        + 2 * (tk_eff + nx) * 4
        + 2 * tm_eff * nx * np.dtype(out_dtype).itemsize
        + tm_eff * nx * 4
    )
    vmem_limit = min(max(int(working_set * 1.5), 16 * 1024 * 1024),
                     100 * 1024 * 1024)

    cost = pl.CostEstimate(
        flops=4 * M_pad * nx * n_state,                 # two matmuls
        transcendentals=M_pad * n_state,                # tanh in gelu
        bytes_accessed=int(2 * M_pad * nx * itemsize
                           + grid_m * 2 * nx * n_state * itemsize),
    )

    out2d = pl.pallas_call(
        mlp_kernel,
        out_shape=jax.ShapeDtypeStruct((M_pad, nx), out_dtype),
        grid_spec=pltpu.PrefetchScalarGridSpec(
            num_scalar_prefetch=0,
            grid=(grid_m, grid_k),
            in_specs=[
                pl.BlockSpec((tm_eff, nx), lambda i, k: (i, 0)),     # x tile
                pl.BlockSpec((nx, tk_eff), lambda i, k: (0, k)),     # W_fc slab
                pl.BlockSpec((1, tk_eff), lambda i, k: (0, k)),      # b_fc slab
                pl.BlockSpec((tk_eff, nx), lambda i, k: (k, 0)),     # W_proj slab
                pl.BlockSpec((1, nx), lambda i, k: (0, 0)),          # b_proj
            ],
            out_specs=pl.BlockSpec((tm_eff, nx), lambda i, k: (i, 0)),
            scratch_shapes=[pltpu.VMEM((tm_eff, nx), jnp.float32)],
        ),
        compiler_params=pltpu.CompilerParams(
            dimension_semantics=("parallel", "arbitrary"),
            vmem_limit_bytes=vmem_limit,
        ),
        cost_estimate=cost,
    )(x2d, w_fc_c, b_fc2, w_proj_c, b_proj2)

    return out2d[:M].reshape(batch, seq, nx)


def _reference(x, w_fc, b_fc, w_proj, b_proj):
    h = jnp.einsum("bsd,dh->bsh", x, w_fc) + b_fc
    h = _gelu_new(h)
    return jnp.einsum("bsh,hd->bsd", h, w_proj) + b_proj


if __name__ == "__main__":
    # Small-but-lane-dense config: nx = 128, n_state = 4*nx = 512 (GPT-2 ratio).
    batch, seq, nx = 2, 12, 128
    n_state = 4 * nx

    key = jax.random.PRNGKey(0)
    kx, kw1, kb1, kw2, kb2 = jax.random.split(key, 5)

    x = jax.random.normal(kx, (batch, seq, nx), dtype=jnp.float32)
    # Conv1D-style init: weight ~ N(0, 0.02), small nonzero biases for a
    # stricter test.
    w_fc = 0.02 * jax.random.normal(kw1, (nx, n_state), dtype=jnp.float32)
    b_fc = 0.01 * jax.random.normal(kb1, (n_state,), dtype=jnp.float32)
    w_proj = 0.02 * jax.random.normal(kw2, (n_state, nx), dtype=jnp.float32)
    b_proj = 0.01 * jax.random.normal(kb2, (nx,), dtype=jnp.float32)

    ref = _reference(x, w_fc, b_fc, w_proj, b_proj)

    # f32 path: small tm to exercise padding (M=24 -> 32), 2-step n_state
    # reduction, and the output slice-back.
    out = gpt2_mlp(x, w_fc, b_fc, w_proj, b_proj, tm=16, tk=256)
    out = jax.block_until_ready(out)
    assert out.shape == (batch, seq, nx)
    assert jnp.allclose(out, ref, atol=2e-3, rtol=2e-2), "f32 mismatch vs reference"

    # bf16 compute path (MXU-native on v6e/v7x); f32 accumulation, loose check.
    out_bf16 = gpt2_mlp(x, w_fc, b_fc, w_proj, b_proj, tm=256, tk=512,
                        compute_dtype=jnp.bfloat16)
    out_bf16 = jax.block_until_ready(out_bf16)
    assert jnp.allclose(out_bf16, ref, atol=1e-2, rtol=5e-2), \
        "bf16 mismatch vs reference"

    print("KERNEL_OK")
</pallas_src>

<mosaic_0001>
module attributes {stable_mosaic.version = 11 : i64} {
  func.func @mlp_kernel(%arg0: i32, %arg1: i32, %arg2: memref<16x128xf32, #tpu.memory_space<vmem>>, %arg3: memref<128x256xf32, #tpu.memory_space<vmem>>, %arg4: memref<1x256xf32, #tpu.memory_space<vmem>>, %arg5: memref<256x128xf32, #tpu.memory_space<vmem>>, %arg6: memref<1x128xf32, #tpu.memory_space<vmem>>, %arg7: memref<16x128xf32, #tpu.memory_space<vmem>>, %arg8: memref<16x128xf32, #tpu.memory_space<vmem>>) attributes {dimension_semantics = [#tpu.dimension_semantics<parallel>, #tpu.dimension_semantics<arbitrary>], iteration_bounds = array<i64: 2, 2>, scalar_prefetch = 0 : i64, scratch_operands = 1 : i64, tpu.core_type = #tpu.core_type<tc>, window_params = [{transform_indices = @transform_0, window_bounds = array<i64: 16, 128>}, {transform_indices = @transform_1, window_bounds = array<i64: 128, 256>}, {transform_indices = @transform_2, window_bounds = array<i64: 1, 256>}, {transform_indices = @transform_3, window_bounds = array<i64: 256, 128>}, {pipeline_mode = #tpu.pipeline_mode<synchronous>, transform_indices = @transform_4, window_bounds = array<i64: 1, 128>}, {transform_indices = @transform_5, window_bounds = array<i64: 16, 128>}]} {
    %c0_i32 = arith.constant 0 : i32
    %0 = arith.cmpi eq, %arg1, %c0_i32 : i32
    %1 = arith.extui %0 : i1 to i32
    %c0_i32_0 = arith.constant 0 : i32
    %2 = arith.cmpi ne, %1, %c0_i32_0 : i32
    scf.if %2 {
      %cst_18 = arith.constant 0.000000e+00 : f32
      %30 = vector.broadcast %cst_18 : f32 to vector<16x128xf32>
      %c0_19 = arith.constant 0 : index
      %c0_20 = arith.constant 0 : index
      %31 = vector.load %arg8[%c0_19, %c0_20] : memref<16x128xf32, #tpu.memory_space<vmem>>, vector<16x128xf32>
      tpu.vector_store %arg8[%c0_19, %c0_20], %30 {strides = array<i32>} : memref<16x128xf32, #tpu.memory_space<vmem>>, vector<16x128xf32>,
    } else {
    }
    %c0 = arith.constant 0 : index
    %c0_1 = arith.constant 0 : index
    %3 = vector.load %arg2[%c0, %c0_1] : memref<16x128xf32, #tpu.memory_space<vmem>>, vector<16x128xf32>
    %c0_2 = arith.constant 0 : index
    %c0_3 = arith.constant 0 : index
    %4 = vector.load %arg3[%c0_2, %c0_3] : memref<128x256xf32, #tpu.memory_space<vmem>>, vector<128x256xf32>
    %cst = arith.constant dense<0.000000e+00> : vector<16x256xf32>
    %5 = tpu.matmul %3, %4, %cst {dimension_numbers = #tpu.dot_dimension_numbers<[1], [0], [0], [1], [0, 0, 1, 1], [], []>} : vector<16x128xf32>, vector<128x256xf32>, vector<16x256xf32> -> vector<16x256xf32>
    %c0_4 = arith.constant 0 : index
    %c0_5 = arith.constant 0 : index
    %6 = vector.load %arg4[%c0_4, %c0_5] : memref<1x256xf32, #tpu.memory_space<vmem>>, vector<1x256xf32>
    %7 = vector.broadcast %6 : vector<1x256xf32> to vector<16x256xf32>
    %8 = arith.addf %5, %7 : vector<16x256xf32>
    %9 = arith.mulf %8, %8 : vector<16x256xf32>
    %10 = arith.mulf %9, %8 : vector<16x256xf32>
    %cst_6 = arith.constant 5.000000e-01 : f32
    %11 = vector.broadcast %cst_6 : f32 to vector<16x256xf32>
    %12 = arith.mulf %11, %8 : vector<16x256xf32>
    %cst_7 = arith.constant 4.471500e-02 : f32
    %13 = vector.broadcast %cst_7 : f32 to vector<16x256xf32>
    %14 = arith.mulf %13, %10 : vector<16x256xf32>
    %15 = arith.addf %8, %14 : vector<16x256xf32>
    %cst_8 = arith.constant 0.797884583 : f32
    %16 = vector.broadcast %cst_8 : f32 to vector<16x256xf32>
    %17 = arith.mulf %16, %15 : vector<16x256xf32>
    %18 = math.tanh %17 : vector<16x256xf32>
    %cst_9 = arith.constant 1.000000e+00 : f32
    %19 = vector.broadcast %cst_9 : f32 to vector<16x256xf32>
    %20 = arith.addf %19, %18 : vector<16x256xf32>
    %21 = arith.mulf %12, %20 : vector<16x256xf32>
    %c0_10 = arith.constant 0 : index
    %c0_11 = arith.constant 0 : index
    %22 = vector.load %arg8[%c0_10, %c0_11] : memref<16x128xf32, #tpu.memory_space<vmem>>, vector<16x128xf32>
    %c0_12 = arith.constant 0 : index
    %c0_13 = arith.constant 0 : index
    %23 = vector.load %arg5[%c0_12, %c0_13] : memref<256x128xf32, #tpu.memory_space<vmem>>, vector<256x128xf32>
    %cst_14 = arith.constant dense<0.000000e+00> : vector<16x128xf32>
    %24 = tpu.matmul %21, %23, %cst_14 {dimension_numbers = #tpu.dot_dimension_numbers<[1], [0], [0], [1], [0, 0, 1, 1], [], []>} : vector<16x256xf32>, vector<256x128xf32>, vector<16x128xf32> -> vector<16x128xf32>
    %25 = arith.addf %22, %24 : vector<16x128xf32>
    %c0_15 = arith.constant 0 : index
    %c0_16 = arith.constant 0 : index
    %26 = vector.load %arg8[%c0_15, %c0_16] : memref<16x128xf32, #tpu.memory_space<vmem>>, vector<16x128xf32>
    tpu.vector_store %arg8[%c0_15, %c0_16], %25 {strides = array<i32>} : memref<16x128xf32, #tpu.memory_space<vmem>>, vector<16x128xf32>,
    %c1_i32 = arith.constant 1 : i32
    %27 = arith.cmpi eq, %arg1, %c1_i32 : i32
    %28 = arith.extui %27 : i1 to i32
    %c0_i32_17 = arith.constant 0 : i32
    %29 = arith.cmpi ne, %28, %c0_i32_17 : i32
    scf.if %29 {
      %c0_18 = arith.constant 0 : index
      %c0_19 = arith.constant 0 : index
      %30 = vector.load %arg8[%c0_18, %c0_19] : memref<16x128xf32, #tpu.memory_space<vmem>>, vector<16x128xf32>
      %c0_20 = arith.constant 0 : index
      %c0_21 = arith.constant 0 : index
      %31 = vector.load %arg6[%c0_20, %c0_21] : memref<1x128xf32, #tpu.memory_space<vmem>>, vector<1x128xf32>
      %32 = vector.broadcast %31 : vector<1x128xf32> to vector<16x128xf32>
      %33 = arith.addf %30, %32 : vector<16x128xf32>
      %c0_22 = arith.constant 0 : index
      %c0_23 = arith.constant 0 : index
      %34 = vector.load %arg7[%c0_22, %c0_23] : memref<16x128xf32, #tpu.memory_space<vmem>>, vector<16x128xf32>
      tpu.vector_store %arg7[%c0_22, %c0_23], %33 {strides = array<i32>} : memref<16x128xf32, #tpu.memory_space<vmem>>, vector<16x128xf32>,
    } else {
    }
    return
  }
  func.func @transform_0(%arg0: i32, %arg1: i32) -> (i32, i32) {
    %c0_i32 = arith.constant 0 : i32
    %c0_i32_0 = arith.constant 0 : i32
    return %arg0, %c0_i32 : i32, i32
  }
  func.func @transform_1(%arg0: i32, %arg1: i32) -> (i32, i32) {
    %c0_i32 = arith.constant 0 : i32
    %c0_i32_0 = arith.constant 0 : i32
    return %c0_i32, %arg1 : i32, i32
  }
  func.func @transform_2(%arg0: i32, %arg1: i32) -> (i32, i32) {
    %c0_i32 = arith.constant 0 : i32
    %c0_i32_0 = arith.constant 0 : i32
    return %c0_i32, %arg1 : i32, i32
  }
  func.func @transform_3(%arg0: i32, %arg1: i32) -> (i32, i32) {
    %c0_i32 = arith.constant 0 : i32
    %c0_i32_0 = arith.constant 0 : i32
    return %arg1, %c0_i32 : i32, i32
  }
  func.func @transform_4(%arg0: i32, %arg1: i32) -> (i32, i32) {
    %c0_i32 = arith.constant 0 : i32
    %c0_i32_0 = arith.constant 0 : i32
    %c0_i32_1 = arith.constant 0 : i32
    return %c0_i32, %c0_i32_0 : i32, i32
  }
  func.func @transform_5(%arg0: i32, %arg1: i32) -> (i32, i32) {
    %c0_i32 = arith.constant 0 : i32
    %c0_i32_0 = arith.constant 0 : i32
    return %arg0, %c0_i32 : i32, i32
  }
}

</mosaic_0001>

<bundles_post_ra>
// kernel: gpt2_mlp.1
= control target key start
LH: loop header
LB: loop body
LE: loop exit
PB: predicated region body
PF: predicated region fallthrough
CT: control target
= control target key end

     0   :  { %s1442_s0 = inlined_call_operand.vmem [shape: f32[32,128], index: 0, kind: input, shape index: {}]   ;;  %s1443_s1 = inlined_call_operand.hbm [shape: f32[128,512], index: 1, kind: input, shape index: {}]   ;;  %s1444_s2 = inlined_call_operand.vmem [shape: f32[1,512], index: 2, kind: input, shape index: {}]   ;;  %s1445_s3 = inlined_call_operand.hbm [shape: f32[512,128], index: 3, kind: input, shape index: {}]   ;;  %s1446_s4 = inlined_call_operand.vmem [shape: f32[1,128], index: 4, kind: input, shape index: {}]   ;;  %s1447_s5 = inlined_call_operand.vmem [shape: f32[32,128], index: 5, kind: output, shape index: {}]  }
   0x1   :  { %1449 = sst [smem:[#allocation10_spill]] %s1443_s1 }
   0x2   :  { %10 = vsyncpa [#allocation4], 0 }
   0x3   :  { %12 = vsyncpa [#allocation4 + $0x1], 0 }
   0x4   :  { %13 = vsyncpa [#allocation6], 0 }
   0x5   :  { %15 = vsyncpa [#allocation6 + $0x1], 0  ;;  %s1148_s18 = smov 0   ;;  %s1150_s19 = smov 0  }
   0x6   :  { %s1152_s20 = smov 0   ;;  %s1154_s21 = smov 0  }
   0x7   :  { %s1156_s22 = smov 0   ;;  %s1158_s23 = smov 0  }
   0x8   :  { %s1160_s24 = smov 0   ;;  %s1162_s25 = smov 0  }
   0x9 LB: > { %s759_s26 = sadd.s32 4294967295, %s1107_s25   ;;  %s30_s27 = sadd.s32 1, %s1099_s23  ;;  %s1107_s25 = sphi %s1162_s25, %s21_s25   ;;  %s1103_s24 = sphi %s1160_s24, %s1465_s24   ;;  %s1099_s23 = sphi %s1158_s23, %s1464_s23   ;;  %s1095_s22 = sphi %s1156_s22, %s1463_s22   ;;  %s1091_s21 = sphi %s1154_s21, %s1462_s21   ;;  %s1087_s20 = sphi %s1152_s20, %s1461_s20   ;;  %s1083_s19 = sphi %s1150_s19, %s1460_s19   ;;  %s1079_s18 = sphi %s1148_s18, %s1459_s18  }
   0xa   : > { %p31_p0 = scmp.ge.s32.totalorder %s30_s27, 2  ;;  %s33_s28 = sadd.s32 1, %s1103_s24 }
   0xb   : > { %s66_s29 = sadd.s32 1, %s1087_s20  ;;  %p73_p1 = scmp.ne.s32.totalorder %s1087_s20, %s1083_s19 }
   0xc   : > { %s1467_s27 = smov (%p31_p0, %s30_s27), 0  ;;  %s1469_s28 = smov (!%p31_p0, %s33_s28), %s1103_s24 }
   0xd   : > { %s63_s30 = ssub.s32 %s1099_s23, %s1467_s27  ;;  %p74_p2 = scmp.eq.s32.totalorder %s1107_s25, 0 }
   0xe   : > { %p35_p3 = scmp.ge.s32.totalorder %s1469_s28, 2  ;;  %p64_p4 = scmp.eq.s32.totalorder %s63_s30, 0 }
   0xf   : > { %p1198_p5 = por %p74_p2, %p73_p1  ;;  %p79_p6 = scmp.ne.s32.totalorder %s1083_s19, %s1079_s18 }
  0x10   : > { %s1471_s28 = smov (%p35_p3, %s1469_s28), 0  ;;  %p80_p7 = scmp.eq.s32.totalorder %s759_s26, 0 }
  0x11   : > { %1451 = sst [smem:[#allocation9_spill]] %s1471_s28  ;;  %p897_p8 = scmp.lt.s32.totalorder %s1107_s25, 4 }
  0x12   : > { %s1206_s7 = scalar_select %p64_p4, %s1087_s20, %s66_s29  }
  0x13   : > { %s1210_s8 = sand.u32 1, %s1087_s20   ;;  %p1212_p9 = por %p80_p7, %p79_p6 }
  0x14   : > { %s763_s10 = sshll.u32 %s1210_s8, 8  ;;  %s782_s11 = sshll.u32 %s1099_s23, 8 }
  0x15   : > { %s1452_s9 = scalar_select %p1212_p9, 1, 0 }
  0x16   : > { %s1453_s1 = sld [smem:[#allocation10_spill]]  ;;  %s218_s15 = scalar_lea.vmem [#allocation3], %s763_s10 }
  0x17   : > { %s225_s16 = sshll.u32 %s218_s15, 4  ;;  %p1227_p10 = pnand %p897_p8, %p1198_p5  ;;  %s1231_s16 = int_to_ptr.vmem [resolvable:$true] %s225_s16 }
  0x18   : > { %s215_s18 = scalar_lea.sflag [#allocation4], %s1210_s8 }
  0x19   : > { %p979_p13 = pneg %p1227_p10 }
  0x1c   : > { %s1221_s14 = scalar_lea.hbm %s1453_s1, %s782_s11  ;;  %s982_s6 = scalar_lea.hbm %s1453_s1, 8192 }
  0x1d   : > { %s977_s26 = scalar_lea.hbm %s1221_s14, 4096  ;;  %p983_p2 = scmp.lt.u32.totalorder %s1221_s14, %s1453_s1 }
  0x1e   : > { %p978_p12 = scmp.ne.s32.totalorder %s1221_s14, %s977_s26  ;;  %p984_p3 = scmp.lt.u32.totalorder %s982_s6, %s977_s26 }
  0x1f   : > { %p986_p5 = scmp.lt.u32.totalorder %s977_s26, %s1221_s14 }
  0x20   : > { %p980_p0 = pnand %p979_p13, %p978_p12  ;;  %p985_p4 = por %p984_p3, %p983_p2 }
  0x22   : > { %p981_p1 = pneg %p980_p0  ;;  %p987_p6 = por %p986_p5, %p985_p4 }
  0x24   : > { %p988_p7 = pnand %p987_p6, %p981_p1 }
  0x26   : > { %991 = shalt.err (!%p988_p7)
}
  0x27   : > { %s992_s13 = scalar_lea.vmem %s1231_s16, 4096  ;;  %s1109_s15 = smov [#allocation3]  }
  0x28   : > { %p993_p8 = scmp.ne.s32.totalorder %s1231_s16, %s992_s13  ;;  %s997_s29 = sshll.u32 %s1109_s15, 4  ;;  %s998_s29 = int_to_ptr.vmem [resolvable:$false] %s997_s29 }
  0x29   : > { %s999_s30 = scalar_lea.vmem %s998_s29, 8192  ;;  %p1000_p11 = scmp.lt.s32.totalorder %s1231_s16, %s998_s29 }
  0x2a   : > { %p995_p12 = pnand %p993_p8, %p979_p13  ;;  %p1001_p2 = scmp.lt.s32.totalorder %s999_s30, %s992_s13 }
  0x2c   : > { %p996_p0 = pneg %p995_p12  ;;  %p1002_p3 = por %p1001_p2, %p1000_p11 }
  0x2e   : > { %p1003_p4 = pnand %p1002_p3, %p996_p0 }
  0x30   : > { %1006 = shalt.err (!%p1003_p4)
}
  0x31   : > { %s1110_s26 = smov 512   ;;  %s1111_s6 = smov 256  }
  0x32   : > { %s1112_s11 = smov 16   ;;  %p262_p1 = scmp.lt.s32.totalorder %s1107_s25, 5 }
  0x33   : > { %893 = dma.hbm_to_vmem [thread:$0]  (!%p1227_p10), %s1221_s14, 4096, %s1231_s16, %s215_s18, %s1110_s26, %s1111_s6, %s1112_s11  }
  0x34   : > { %s783_s12 = sshll.u32 %s1099_s23, 12  ;;  %p1455_p11 = scmp.ge.s32.totalorder %s1107_s25, 1 }
  0x35   : > { %s1273_s30 = scalar_lea.hbm %s1445_s3, %s783_s12  ;;  %s247_s1 = scalar_lea.vmem [#allocation5], %s763_s10 }
  0x36   : > { %p1266_p5 = pnand %p1455_p11, %p262_p1  ;;  %s254_s28 = sshll.u32 %s247_s1, 4  ;;  %s1277_s28 = int_to_ptr.vmem [resolvable:$true] %s254_s28 }
  0x37   : > { %s244_s14 = scalar_lea.sflag [#allocation6], %s1210_s8  ;;  %s1007_s16 = scalar_lea.hbm %s1273_s30, 4096 }
  0x38   : > { %p1008_p6 = scmp.ne.s32.totalorder %s1273_s30, %s1007_s16  ;;  %s1012_s6 = scalar_lea.hbm %s1445_s3, 8192 }
  0x39   : > { %p1013_p12 = scmp.lt.u32.totalorder %s1273_s30, %s1445_s3  ;;  %p1014_p0 = scmp.lt.u32.totalorder %s1012_s6, %s1007_s16 }
  0x3a   : > { %p1010_p7 = pnand %p1008_p6, %p979_p13  ;;  %p1016_p3 = scmp.lt.u32.totalorder %s1007_s16, %s1273_s30 }
  0x3b   : > { %p1015_p2 = por %p1014_p0, %p1013_p12 }
  0x3c   : > { %p1011_p8 = pneg %p1010_p7 }
  0x3d   : > { %p1017_p4 = por %p1016_p3, %p1015_p2 }
  0x3f   : > { %p1018_p1 = pnand %p1017_p4, %p1011_p8 }
  0x41   : > { %1021 = shalt.err (!%p1018_p1)
}
  0x42   : > { %s1022_s1 = scalar_lea.vmem %s1277_s28, 4096  ;;  %s1113_s10 = smov [#allocation5]  }
  0x43   : > { %p1023_p11 = scmp.ne.s32.totalorder %s1277_s28, %s1022_s1  ;;  %s1027_s15 = sshll.u32 %s1113_s10, 4  ;;  %s1028_s15 = int_to_ptr.vmem [resolvable:$false] %s1027_s15 }
  0x44   : > { %s1029_s29 = scalar_lea.vmem %s1028_s15, 8192  ;;  %p1030_p9 = scmp.lt.s32.totalorder %s1277_s28, %s1028_s15 }
  0x45   : > { %p1025_p6 = pnand %p1023_p11, %p979_p13  ;;  %p1031_p12 = scmp.lt.s32.totalorder %s1029_s29, %s1022_s1 }
  0x47   : > { %p1026_p7 = pneg %p1025_p6  ;;  %p1032_p0 = por %p1031_p12, %p1030_p9 }
  0x49   : > { %p1033_p2 = pnand %p1032_p0, %p1026_p7 }
  0x4b   : > { %1036 = shalt.err (!%p1033_p2)
}
  0x4c   : > { %s1114_s16 = smov 128   ;;  %s1115_s18 = smov 8  }
  0x4d   : > { %896 = dma.hbm_to_vmem [thread:$0]  (!%p1227_p10), %s1273_s30, 4096, %s1277_s28, %s244_s14, %s1114_s16, %s1114_s16, %s1115_s18  }
  0x4e   : > { %266 = sbr.rel (%p1266_p5) target bundleno = 609 (0x261), region = 40  ;;  %s268_s26 = sand.u32 (!%p1266_p5), 1, %s1083_s19  }
  0x4f   : > { %s770_s6 = sshll.u32 (!%p1266_p5), %s268_s26, 8  ;;  %s269_s11 = scalar_lea.sflag (!%p1266_p5), [#allocation4], %s268_s26 }
  0x50   : > { %s1308_s12 = scalar_lea.vmem (!%p1266_p5), [#allocation3], %s770_s6  ;;  %p1457_p9 = scmp.ne.s32.totalorder (!%p1266_p5), %s1452_s9, 0 }
  0x55   : > { %1070 = dma.done.wait (%p1457_p9), %s269_s11, 4096  }
  0x56   : > { %1072 = vsyncadd (%p1457_p9), %s269_s11, 4294963200  ;;  %s278_s1 = scalar_lea.sflag [#allocation6], %s268_s26  ;;  %s1314_s17 = scalar_lea.vmem [#allocation5], %s770_s6 }
  0x57   : > { %1074 = dma.done.wait (%p1457_p9), %s278_s1, 4096  }
  0x58   : > { %1076 = vsyncadd (%p1457_p9), %s278_s1, 4294963200  ;;  %s772_s28 = sshll.u32 %s1095_s22, 1  ;;  %s774_s8 = sshll.u32 %s1091_s21, 1 }
  0x59   : > { %p323_p10 = scmp.lt.s32.totalorder %s772_s28, 3  ;;  %p330_p13 = scmp.lt.s32.totalorder %s774_s8, 3 }
  0x5a   : > { %p777_p5 = scmp.ne.s32.totalorder %s1091_s21, 0 }
  0x5b   : > { %s1473_s28 = smov (!%p323_p10, %s772_s28), 3  ;;  %s1475_s8 = smov (!%p330_p13, %s774_s8), 3 }
  0x5c   : > { %s773_s13 = sshll.u32 %s1473_s28, 3  ;;  %s332_s9 = scalar_lea.vmem %s1444_s2, %s1475_s8  ;;  %v1116_v0 = vmov (!%p777_p5), 0.0  }
  0x5d   : > { %s1327_s10 = scalar_lea.vmem %s1442_s0, %s773_s13  ;;  %s1336_s22 = scalar_lea.vmem %s1447_s5, %s773_s13  ;;  %345 = vst [vmem:[#allocation2] sm:$0xff] (!%p777_p5), %v1116_v0  ;;  %346 = vst [vmem:[#allocation2 + $0x8] sm:$0xff] (!%p777_p5), %v1116_v0 }
  0x5e   : > { %344 = sbr.rel (%p777_p5) target bundleno = 101 (0x65), region = 52 }
  0x65 PF: > { %v350_v1 = vld [vmem:[%s1308_s12 + $0x8] sm:$0xff]  ;;  %v352_v2 = vld [vmem:[%s1308_s12 + $0x18] sm:$0xff]  ;;  %v349_v3 = vld [vmem:[%s1308_s12] sm:$0xff]  ;;  %v1117_v8 = vmov 0.0   ;;  %p778_p8 = scmp.ne.s32.totalorder %s1091_s21, 1 }
  0x66   : > { %v822_v4 = vpack.c.bf16 %v352_v2, %v350_v1  ;;  %v351_v5 = vld [vmem:[%s1308_s12 + $0x10] sm:$0xff]  ;;  %v354_v6 = vld [vmem:[%s1308_s12 + $0x28] sm:$0xff]  ;;  %v356_v7 = vld [vmem:[%s1308_s12 + $0x38] sm:$0xff]  ;;  %457 = vmatprep.mubr.f32.mxu0 %v1117_v8 }
  0x67   : > { %v824_v9 = vpack.c.bf16 %v351_v5, %v349_v3  ;;  %v826_v10 = vpack.c.bf16 %v356_v7, %v354_v6  ;;  %v353_v11 = vld [vmem:[%s1308_s12 + $0x20] sm:$0xff]  ;;  %v355_v12 = vld [vmem:[%s1308_s12 + $0x30] sm:$0xff]  ;;  %v358_v13 = vld [vmem:[%s1308_s12 + $0x48] sm:$0xff] }
  0x68   : > { %823 = vmatprep.subr.bf16.mxu0 %v822_v4  ;;  %v360_v14 = vld [vmem:[%s1308_s12 + $0x58] sm:$0xff]  ;;  %v828_v15 = vpack.c.bf16 %v355_v12, %v353_v11  ;;  %v357_v17 = vld [vmem:[%s1308_s12 + $0x40] sm:$0xff]  ;;  %v359_v18 = vld [vmem:[%s1308_s12 + $0x50] sm:$0xff] }
  0x69   : > { %825 = vmatpush1.bf16.msra.mxu0 %v824_v9  ;;  %v830_v16 = vpack.c.bf16 %v360_v14, %v358_v13  ;;  %v362_v19 = vld [vmem:[%s1308_s12 + $0x68] sm:$0xff]  ;;  %v364_v20 = vld [vmem:[%s1308_s12 + $0x78] sm:$0xff]  ;;  %v832_v21 = vpack.c.bf16 %v359_v18, %v357_v17  ;;  %v361_v23 = vld [vmem:[%s1308_s12 + $0x60] sm:$0xff] }
  0x6a   : > { %827 = vmatprep.subr.bf16.mxu0 %v826_v10  ;;  %v834_v22 = vpack.c.bf16 %v364_v20, %v362_v19  ;;  %v363_v24 = vld [vmem:[%s1308_s12 + $0x70] sm:$0xff]  ;;  %v366_v25 = vld [vmem:[%s1308_s12 + $0x88] sm:$0xff]  ;;  %v368_v26 = vld [vmem:[%s1308_s12 + $0x98] sm:$0xff] }
  0x6b   : > { %v524_v27 = vld [vmem:[%s1314_s17 + $0x80] sm:$0xff]  ;;  %v525_v28 = vld [vmem:[%s1314_s17 + $0x88] sm:$0xff]  ;;  %v836_v29 = vpack.c.bf16 %v363_v24, %v361_v23  ;;  %v838_v33 = vpack.c.bf16 %v368_v26, %v366_v25  ;;  %v367_v35 = vld [vmem:[%s1308_s12 + $0x90] sm:$0xff] }
  0x6c   : > { %v854_v30 = vpack.c.bf16 %v525_v28, %v524_v27  ;;  %v508_v31 = vld [vmem:[%s1314_s17] sm:$0xff]  ;;  %v509_v32 = vld [vmem:[%s1314_s17 + $0x8] sm:$0xff]  ;;  %v372_v38 = vld [vmem:[%s1308_s12 + $0xb8] sm:$0xff] }
  0x6d   : > { %829 = vmatpush1.bf16.msra.mxu0 %v828_v15  ;;  %v365_v34 = vld [vmem:[%s1308_s12 + $0x80] sm:$0xff]  ;;  %v856_v36 = vpack.c.bf16 %v509_v32, %v508_v31  ;;  %v370_v37 = vld [vmem:[%s1308_s12 + $0xa8] sm:$0xff]  ;;  %v371_v42 = vld [vmem:[%s1308_s12 + $0xb0] sm:$0xff] }
  0x6e   : > { %831 = vmatprep.subr.bf16.mxu0 %v830_v16  ;;  %855 = vmatprep.subr.bf16.mxu1 %v854_v30  ;;  %v840_v39 = vpack.c.bf16 %v367_v35, %v365_v34  ;;  %v842_v40 = vpack.c.bf16 %v372_v38, %v370_v37  ;;  %v369_v41 = vld [vmem:[%s1308_s12 + $0xa0] sm:$0xff]  ;;  %v374_v43 = vld [vmem:[%s1308_s12 + $0xc8] sm:$0xff]  ;;  %v376_v44 = vld [vmem:[%s1308_s12 + $0xd8] sm:$0xff] }
  0x6f   : > { %857 = vmatpush3.bf16.msra.mxu1 %v856_v36  ;;  %v844_v45 = vpack.c.bf16 %v371_v42, %v369_v41  ;;  %v846_v46 = vpack.c.bf16 %v376_v44, %v374_v43  ;;  %v373_v47 = vld [vmem:[%s1308_s12 + $0xc0] sm:$0xff]  ;;  %v375_v48 = vld [vmem:[%s1308_s12 + $0xd0] sm:$0xff]  ;;  %v378_v49 = vld [vmem:[%s1308_s12 + $0xe8] sm:$0xff]  ;;  %v383_v36 = vlaneseq }
  0x70   : > { %v380_v50 = vld [vmem:[%s1308_s12 + $0xf8] sm:$0xff]  ;;  %v848_v51 = vpack.c.bf16 %v375_v48, %v373_v47  ;;  %v377_v53 = vld [vmem:[%s1308_s12 + $0xe0] sm:$0xff]  ;;  %v379_v54 = vld [vmem:[%s1308_s12 + $0xf0] sm:$0xff] }
  0x71   : > { %833 = vmatpush1.bf16.msra.mxu0 %v832_v21  ;;  %v850_v52 = vpack.c.bf16 %v380_v50, %v378_v49  ;;  %v852_v55 = vpack.c.bf16 %v379_v54, %v377_v53  ;;  %v347_v56 = vld [vmem:[%s1327_s10] sm:$0xff]  ;;  %v348_v57 = vld [vmem:[%s1327_s10 + $0x8] sm:$0xff]  ;;  %v528_v0 = vld [vmem:[%s1314_s17 + $0xa0] sm:$0xff]  ;;  %v384_v37 = vshrl.u32 %v383_v36, 7 }
  0x72   : > { %835 = vmatprep.subr.bf16.mxu0 %v834_v22  ;;  %v526_v58 = vld [vmem:[%s1314_s17 + $0x90] sm:$0xff]  ;;  %v527_v59 = vld [vmem:[%s1314_s17 + $0x98] sm:$0xff]  ;;  %v529_v1 = vld [vmem:[%s1314_s17 + $0xa8] sm:$0xff] }
  0x73   : > { %v858_v60 = vpack.c.bf16 %v527_v59, %v526_v58  ;;  %v510_v61 = vld [vmem:[%s1314_s17 + $0x10] sm:$0xff]  ;;  %v511_v62 = vld [vmem:[%s1314_s17 + $0x18] sm:$0xff]  ;;  %v862_v2 = vpack.c.bf16 %v529_v1, %v528_v0  ;;  %v512_v3 = vld [vmem:[%s1314_s17 + $0x20] sm:$0xff]  ;;  %v385_v38 = vsub.s32 0, %v384_v37 }
  0x74   : > { %v860_v63 = vpack.c.bf16 %v511_v62, %v510_v61  ;;  %v513_v4 = vld [vmem:[%s1314_s17 + $0x28] sm:$0xff]  ;;  %v530_v6 = vld [vmem:[%s1314_s17 + $0xb0] sm:$0xff]  ;;  %v531_v7 = vld [vmem:[%s1314_s17 + $0xb8] sm:$0xff] }
  0x75   : > { %837 = vmatpush1.bf16.msra.mxu0 %v836_v29  ;;  %859 = vmatprep.subr.bf16.mxu1 %v858_v60  ;;  %v864_v5 = vpack.c.bf16 %v513_v4, %v512_v3  ;;  %v514_v9 = vld [vmem:[%s1314_s17 + $0x30] sm:$0xff]  ;;  %v515_v10 = vld [vmem:[%s1314_s17 + $0x38] sm:$0xff]  ;;  %v532_v12 = vld [vmem:[%s1314_s17 + $0xc0] sm:$0xff] }
  0x76   : > { %839 = vmatprep.subr.bf16.mxu0 %v838_v33  ;;  %861 = vmatpush3.bf16.msra.mxu1 %v860_v63  ;;  %v868_v11 = vpack.c.bf16 %v515_v10, %v514_v9  ;;  %v533_v13 = vld [vmem:[%s1314_s17 + $0xc8] sm:$0xff]  ;;  %v516_v15 = vld [vmem:[%s1314_s17 + $0x40] sm:$0xff]  ;;  %v534_v18 = vld [vmem:[%s1314_s17 + $0xd0] sm:$0xff] }
  0x77   : > { %863 = vmatprep.subr.bf16.mxu1 %v862_v2  ;;  %v870_v14 = vpack.c.bf16 %v533_v13, %v532_v12  ;;  %v517_v16 = vld [vmem:[%s1314_s17 + $0x48] sm:$0xff]  ;;  %v535_v19 = vld [vmem:[%s1314_s17 + $0xd8] sm:$0xff]  ;;  %v518_v21 = vld [vmem:[%s1314_s17 + $0x50] sm:$0xff] }
  0x78   : > { %v872_v17 = vpack.c.bf16 %v517_v16, %v516_v15  ;;  %v874_v20 = vpack.c.bf16 %v535_v19, %v534_v18  ;;  %v519_v22 = vld [vmem:[%s1314_s17 + $0x58] sm:$0xff]  ;;  %v536_v23 = vld [vmem:[%s1314_s17 + $0xe0] sm:$0xff]  ;;  %v537_v25 = vld [vmem:[%s1314_s17 + $0xe8] sm:$0xff] }
  0x79   : > { %841 = vmatpush1.bf16.msra.mxu0 %v840_v39  ;;  %v876_v24 = vpack.c.bf16 %v519_v22, %v518_v21  ;;  %v520_v26 = vld [vmem:[%s1314_s17 + $0x60] sm:$0xff]  ;;  %v521_v27 = vld [vmem:[%s1314_s17 + $0x68] sm:$0xff]  ;;  %v878_v28 = vpack.c.bf16 %v537_v25, %v536_v23  ;;  %v538_v29 = vld [vmem:[%s1314_s17 + $0xf0] sm:$0xff] }
  0x7a   : > { %843 = vmatprep.subr.bf16.mxu0 %v842_v40  ;;  %865 = vmatpush3.bf16.msra.mxu1 %v864_v5  ;;  %v539_v30 = vld [vmem:[%s1314_s17 + $0xf8] sm:$0xff]  ;;  %v880_v31 = vpack.c.bf16 %v521_v27, %v520_v26  ;;  %v522_v33 = vld [vmem:[%s1314_s17 + $0x70] sm:$0xff]  ;;  %v389_v40 = vsub.s32 1, %v384_v37 }
  0x7b   : > { %v882_v32 = vpack.c.bf16 %v539_v30, %v538_v29  ;;  %v523_v34 = vld [vmem:[%s1314_s17 + $0x78] sm:$0xff]  ;;  %v381_v39 = vld [vmem:[%s332_s9] sm:$0x3] }
  0x7c   : > { %v884_v35 = vpack.c.bf16 %v523_v34, %v522_v33  ;;  %v386_v41 = vrot.slane %v381_v39, %v385_v38  ;;  %v390_v42 = vrot.slane %v381_v39, %v389_v40  ;;  %v507_v29 = vld [vmem:[#allocation2 + $0x8] sm:$0xff]  ;;  %v779_v34 = vld [vmem:[%s1446_s4] ss:$0 sm:$0xff] (!%p778_p8) }
  0x7d   : > { %845 = vmatpush1.bf16.msra.mxu0 %v844_v45 }
  0x7e   : > { %847 = vmatprep.subr.bf16.mxu0 %v846_v46 }
  0x81   : > { %849 = vmatpush1.bf16.msra.mxu0 %v848_v51 }
  0x82   : > { %851 = vmatprep.subr.bf16.mxu0 %v850_v52 }
  0x85   : > { %853 = vmatpush1.bf16.msra.mxu0 %v852_v55 }
  0x88   : > { %458 = vmatmul.mubr.f32.vlgmr.msra.gmra.mrb[0].mxu0 %v347_v56 }
  0x89   : > { %463 = vmatprep.mubr.f32.mxu0 %v1117_v8  ;;  %v866_v8 = vpack.c.bf16 %v531_v7, %v530_v6 }
  0x8b   : > { %867 = vmatprep.subr.bf16.mxu1 %v866_v8 }
  0x8c   : > { %464 = vmatmul.mubr.f32.gmra.mrb[2].mxu0 %v348_v57  ;;  %869 = vmatpush3.bf16.msra.mxu1 %v868_v11 }
  0x8d   : > { %871 = vmatprep.subr.bf16.mxu1 %v870_v14 }
  0x90   : > { %873 = vmatpush3.bf16.msra.mxu1 %v872_v17 }
  0x91   : > { %875 = vmatprep.subr.bf16.mxu1 %v874_v20 }
  0x94   : > { %877 = vmatpush3.bf16.msra.mxu1 %v876_v24  ;;  %v506_v24 = vld [vmem:[#allocation2] sm:$0xff] }
  0x95   : > { %879 = vmatprep.subr.bf16.mxu1 %v878_v28 }
  0x98   : > { %881 = vmatpush3.bf16.msra.mxu1 %v880_v31 }
  0x99   : > { %883 = vmatprep.subr.bf16.mxu1 %v882_v32 }
  0x9c   : > { %885 = vmatpush3.bf16.msra.mxu1 %v884_v35 }
 0x15b   : > { %v459_v43 = vpop.f32.mrb[0].mxu0 }
 0x15c   : > { %v460_v44 = vadd.f32 %v459_v43, %v386_v41  ;;  %v461_v45 = vpop.f32.mrb[1].mxu0 }
 0x15d   : > { %v462_v46 = vadd.f32 %v461_v45, %v390_v42 }
 0x15e   : > { %v470_v47 = vmul.f32 %v460_v44, %v460_v44  ;;  %v478_v12 = vmul.f32 0.5, %v460_v44 }
 0x15f   : > { %v471_v48 = vmul.f32 %v462_v46, %v462_v46  ;;  %v465_v49 = vpop.f32.mrb[2].mxu0  ;;  %v479_v10 = vmul.f32 0.5, %v462_v46 }
 0x160   : > { %v474_v50 = vmul.f32 %v470_v47, %v460_v44  ;;  %v466_v51 = vadd.f32 %v465_v49, %v386_v41  ;;  %v467_v52 = vpop.f32.mrb[3].mxu0 }
 0x161   : > { %v468_v53 = vadd.f32 %v467_v52, %v390_v42  ;;  %v475_v54 = vmul.f32 %v471_v48, %v462_v46 }
 0x162   : > { %v482_v55 = vmul.f32 0.044715, %v474_v50  ;;  %v472_v56 = vmul.f32 %v466_v51, %v466_v51  ;;  %v480_v20 = vmul.f32 0.5, %v466_v51 }
 0x163   : > { %v473_v57 = vmul.f32 %v468_v53, %v468_v53  ;;  %v483_v58 = vmul.f32 0.044715, %v475_v54  ;;  %v481_v18 = vmul.f32 0.5, %v468_v53 }
 0x164   : > { %v486_v59 = vadd.f32 %v482_v55, %v460_v44  ;;  %v476_v60 = vmul.f32 %v472_v56, %v466_v51 }
 0x165   : > { %v477_v61 = vmul.f32 %v473_v57, %v468_v53  ;;  %v487_v62 = vadd.f32 %v483_v58, %v462_v46 }
 0x166   : > { %v490_v63 = vmul.f32 0.7978846, %v486_v59  ;;  %v484_v0 = vmul.f32 0.044715, %v476_v60 }
 0x167   : > { %v485_v1 = vmul.f32 0.044715, %v477_v61  ;;  %v491_v2 = vmul.f32 0.7978846, %v487_v62 }
 0x168   : > { %v488_v3 = vadd.f32 %v484_v0, %v466_v51  ;;  %969 = vtanh.f32 %v490_v63 }
 0x169   : > { %v489_v4 = vadd.f32 %v485_v1, %v468_v53  ;;  %971 = vtanh.f32 %v491_v2 }
 0x16a   : > { %v492_v5 = vmul.f32 0.7978846, %v488_v3 }
 0x16b   : > { %v493_v6 = vmul.f32 0.7978846, %v489_v4 }
 0x16c   : > { %973 = vtanh.f32 %v492_v5 }
 0x16d   : > { %975 = vtanh.f32 %v493_v6 }
 0x172   : > { %v970_v7 = vpop.eup %969 }
 0x173   : > { %v972_v8 = vpop.eup %971  ;;  %v498_v9 = vadd.f32 1.0, %v970_v7 }
 0x174   : > { %v499_v11 = vadd.f32 1.0, %v972_v8 }
 0x175   : > { %v502_v16 = vmul.f32 %v498_v9, %v478_v12 }
 0x176   : > { %v974_v13 = vpop.eup %973  ;;  %v503_v14 = vmul.f32 %v499_v11, %v479_v10 }
 0x177   : > { %v976_v15 = vpop.eup %975  ;;  %v500_v17 = vadd.f32 1.0, %v974_v13 }
 0x178   : > { %604 = vmatprep.mubr.f32.mxu1 %v503_v14  ;;  %v501_v19 = vadd.f32 1.0, %v976_v15 }
 0x179   : > { %605 = vmatmul.mubr.f32.vlgmr.msra.gmra.mrb[0].mxu1 %v502_v16  ;;  %v504_v22 = vmul.f32 %v500_v17, %v480_v20 }
 0x17a   : > { %v505_v21 = vmul.f32 %v501_v19, %v481_v18 }
 0x17c   : > { %609 = vmatprep.mubr.f32.mxu1 %v505_v21 }
 0x17d   : > { %610 = vmatmul.mubr.f32.gmra.mrb[2].mxu1 %v504_v22 }
 0x24c   : > { %v816_v23 = vpop.f32.mrb[0].mxu1 }
 0x24d   : > { %v817_v25 = vpop.f32.mrb[1].mxu1 }
 0x24e   : > { %v818_v26 = vadd.f32 %v817_v25, %v816_v23 }
 0x250   : > { %v615_v27 = vadd.f32 %v818_v26, %v506_v24  ;;  %v819_v28 = vpop.f32.mrb[2].mxu1  ;;  %622 = sbr.rel (%p778_p8) target bundleno = 609 (0x261), region = 56 }
 0x251   : > { %v820_v30 = vpop.f32.mrb[3].mxu1 }
 0x252   : > { %617 = vst [vmem:[#allocation2] sm:$0xff] %v615_v27  ;;  %v821_v31 = vadd.f32 %v820_v30, %v819_v28 }
 0x254   : > { %v616_v32 = vadd.f32 %v821_v31, %v507_v29 }
 0x256   : > { %618 = vst [vmem:[#allocation2 + $0x8] sm:$0xff] %v616_v32 }
 0x259   : > { %v623_v33 = vld [vmem:[#allocation2] sm:$0xff] }
 0x25a   : > { %v632_v36 = vadd.f32 %v779_v34, %v623_v33 }
 0x25c   : > { %634 = vst [vmem:[%s1336_s22] sm:$0xff] %v632_v36 }
 0x25d   : > { %v624_v35 = vld [vmem:[#allocation2 + $0x8] sm:$0xff] }
 0x25e   : > { %v633_v37 = vadd.f32 %v779_v34, %v624_v35 }
 0x260   : > { %635 = vst [vmem:[%s1336_s22 + $0x8] sm:$0xff] %v633_v37 }
 0x261 PF: > { %s21_s25 = sadd.s32 1, %s1107_s25   ;;  %s1458_s1 = sld [smem:[#allocation9_spill]] }
 0x262   : > { %p18_p3 = scmp.ge.s32.totalorder %s21_s25, 6   ;;  %s1459_s18 = smov %s1083_s19 }
 0x263   : > { %s1460_s19 = smov %s1087_s20  ;;  %s1461_s20 = smov %s1206_s7 }
 0x264   : > { %s1462_s21 = smov %s1099_s23  ;;  %s1463_s22 = smov %s1103_s24 }
 0x265   : > { %s1464_s23 = smov %s1467_s27  ;;  %20 = sbr.rel (!%p18_p3) target bundleno = 9 (0x9), region = 107 }
 0x267   : > { %s1465_s24 = smov %s1458_s1 }
 0x26c   :  { %658 = vsyncpa [#allocation4], 1 }
 0x26d   :  { %660 = vsyncpa [#allocation4 + $0x1], 1 }
 0x26e   :  { %661 = vsyncpa [#allocation6], 1 }
 0x26f   :  { %663 = vsyncpa [#allocation6 + $0x1], 1 }

</bundles_post_ra>
